<compile_context>
chip_gen: v7x
topology: tpu7x:2x2x1
jax: 0.10.0
libtpu: 0.0.40
codegen_flags: <defaults>
</compile_context>

<pallas_src>
import functools

import numpy as np
import jax
import jax.numpy as jnp
from jax import lax
from jax.experimental import pallas as pl
from jax.experimental.pallas import tpu as pltpu

_LANES = 128
_SUBLANES = 8
_NEG_BIG = -1e30  # additive mask for padded class columns (safe for exp / max)


def _round_up(x, m):
    return (x + m - 1) // m * m


def _l2_normalize(x, eps=1e-12):
    """F.normalize(x, p=2, dim=-1): x / max(||x||, eps), via rsqrt."""
    sumsq = jnp.sum(x * x, axis=-1, keepdims=True)
    return x * lax.rsqrt(jnp.maximum(sumsq, eps * eps))


def _vmem_budget():
    """(default batch tile, vmem_limit_bytes) per TPU generation."""
    try:
        cap = int(pltpu.get_tpu_info().vmem_capacity_bytes)
    except Exception:           # unknown part -> conservative (v7x: 64 MiB)
        cap = 64 * 1024 * 1024
    if cap >= 100 * 1024 * 1024:        # v5e / v6e: 128 MiB physical VMEM
        return 1024, 96 * 1024 * 1024
    return 512, 48 * 1024 * 1024        # v7x: 64 MiB physical VMEM


def _resident_spec(shape, single_buffer=True):
    """BlockSpec for a grid-loop-invariant block (constant index_map).

    Single-buffered (pl.Buffered(1)) when the jax version supports
    pipeline_mode; falls back to the default double-buffered spec otherwise.
    """
    index_map = lambda i: (0,) * len(shape)
    if single_buffer:
        try:
            return pl.BlockSpec(shape, index_map, pipeline_mode=pl.Buffered(1))
        except (TypeError, AttributeError):
            pass
    return pl.BlockSpec(shape, index_map)


def _run_with_fallback(make_call, args):
    """Run with single-buffered resident blocks; retry with default buffering
    if pipeline_mode / Buffered(1) is rejected at lowering time."""
    try:
        return jax.block_until_ready(make_call(True)(*args))
    except Exception:
        return make_call(False)(*args)


# ----------------------------------------------------------------------------
# Kernels
# ----------------------------------------------------------------------------
def _ldam_train_kernel(feat_ref, wn_ref, sm_ref, w_ref, tgt_ref, mask_ref,
                       num_ref, den_ref, *, n_rows, has_pad):
    """One batch tile: f32 normalize -> bf16 MXU matmul (scale folded into the
    weights) -> LDAM margin -> weighted-CE partial sums (num, den)."""
    tn = feat_ref.shape[0]
    c_pad = wn_ref.shape[1]

    feat = feat_ref[...].astype(jnp.float32)                      # (tn, D)
    inv_norm = lax.rsqrt(jnp.maximum(
        jnp.sum(feat * feat, axis=-1, keepdims=True), 1e-24))
    fn = (feat * inv_norm).astype(jnp.bfloat16)

    # logits = s * cosine (scale pre-folded), bf16 operands, f32 accumulation
    logits = lax.dot_general(
        fn, wn_ref[...],
        dimension_numbers=(((1,), (0,)), ((), ())),
        preferred_element_type=jnp.float32)                       # (tn, c_pad)

    col = lax.broadcasted_iota(jnp.int32, (tn, c_pad), 1)
    onehot = (col == tgt_ref[...]).astype(jnp.float32)            # (tn, c_pad)

    # margin only on the target logit; sm_ref = s * m_list[target]  (tn, 1)
    z = logits - onehot * sm_ref[...]
    if has_pad:                       # skipped when C is a multiple of 128
        z = z + mask_ref[...]         # -1e30 on padded class columns

    zmax = jnp.max(z, axis=-1, keepdims=True)
    lse = zmax + jnp.log(jnp.sum(jnp.exp(z - zmax), axis=-1, keepdims=True))
    tgt_z = jnp.sum(onehot * z, axis=-1, keepdims=True)           # s*(cos_t - m_t)
    per_sample = lse - tgt_z                                      # (tn, 1) NLL

    # Mask rows past the real batch. The ragged final tile reads undefined
    # data (possibly NaN), so per_sample must be masked too — w=0 alone does
    # not neutralize NaN (NaN * 0 = NaN).
    row = pl.program_id(0) * tn + lax.broadcasted_iota(jnp.int32, (tn, 1), 0)
    valid = row < n_rows
    w = jnp.where(valid, w_ref[...], 0.0)
    per_sample = jnp.where(valid, per_sample, 0.0)

    num_ref[...] = jnp.broadcast_to(jnp.sum(w * per_sample), num_ref.shape)
    den_ref[...] = jnp.broadcast_to(jnp.sum(w), den_ref.shape)


def _ldam_eval_kernel(feat_ref, wn_ref, out_ref):
    """Eval path: pred_class_logits = s * cosine (s folded into the weights)."""
    feat = feat_ref[...].astype(jnp.float32)
    inv_norm = lax.rsqrt(jnp.maximum(
        jnp.sum(feat * feat, axis=-1, keepdims=True), 1e-24))
    fn = (feat * inv_norm).astype(jnp.bfloat16)
    out_ref[...] = lax.dot_general(
        fn, wn_ref[...],
        dimension_numbers=(((1,), (0,)), ((), ())),
        preferred_element_type=jnp.float32)
    # TODO(synk): emit bf16 here if downstream consumers allow (halves the
    # (tn, Cpad) HBM writeback, biggest relative effect on v5e).


# ----------------------------------------------------------------------------
# Wrapper
# ----------------------------------------------------------------------------
def ldam_forward(features, linear, m_list, weight_list, targets=None,
                 scale=30.0, training=True, tile_n=None):
    """Returns the scalar weighted-CE loss (training) or s*cosine logits (eval)."""
    n, d = features.shape
    c = linear.shape[0]
    c_pad = _round_up(c, _LANES)
    has_pad = c_pad != c

    # Hoisted out of the kernel: L2-normalize the class weights once, fold the
    # scale into them, transpose to (D, Cpad) and cast to bf16 for the MXU.
    wn = _l2_normalize(linear.astype(jnp.float32)) * float(scale)     # (C, D)
    wn_t = jnp.zeros((d, c_pad), jnp.float32).at[:, :c].set(wn.T)
    wn_t = wn_t.astype(jnp.bfloat16)                                  # (D, Cpad)

    # bf16 features halve the per-tile feature DMA; normalization is f32 in-kernel.
    feat = features.astype(jnp.bfloat16)

    # additive class-pad mask row (only consumed when has_pad)
    mask_row = jnp.where(jnp.arange(c_pad) < c, 0.0, _NEG_BIG
                         ).astype(jnp.float32).reshape(1, c_pad)

    default_tn, vmem_limit = _vmem_budget()
    if tile_n is None:
        tile_n = default_tn
    tn = max(_SUBLANES, min(_round_up(int(tile_n), _SUBLANES),
                            _round_up(n, _SUBLANES)))
    grid = (pl.cdiv(n, tn),)       # ragged final tile; no feature pad copy
    g = grid[0]

    compiler_params = pltpu.CompilerParams(
        dimension_semantics=("parallel",),
        vmem_limit_bytes=vmem_limit)

    if not training:
        def make_eval_call(single_buffer):
            return pl.pallas_call(
                _ldam_eval_kernel,
                out_shape=jax.ShapeDtypeStruct((n, c_pad), jnp.float32),
                grid=grid,
                in_specs=[
                    pl.BlockSpec((tn, d), lambda i: (i, 0)),       # features
                    _resident_spec((d, c_pad), single_buffer),     # s * Wn^T
                ],
                out_specs=pl.BlockSpec((tn, c_pad), lambda i: (i, 0)),
                compiler_params=compiler_params,
            )

        out = _run_with_fallback(make_eval_call, (feat, wn_t))
        return out[:, :c]

    # Training path: per-sample margin and class weight gathered in XLA
    # (tiny gathers) instead of two (tn, Cpad) one-hot reductions per tile.
    sm = (float(scale) * m_list.astype(jnp.float32))[targets].reshape(n, 1)
    w_i = weight_list.astype(jnp.float32)[targets].reshape(n, 1)
    tgt = targets.astype(jnp.int32).reshape(n, 1)

    kernel = functools.partial(_ldam_train_kernel, n_rows=int(n),
                               has_pad=bool(has_pad))

    def make_train_call(single_buffer):
        return pl.pallas_call(
            kernel,
            out_shape=(jax.ShapeDtypeStruct((g, _SUBLANES, _LANES), jnp.float32),
                       jax.ShapeDtypeStruct((g, _SUBLANES, _LANES), jnp.float32)),
            grid=grid,
            in_specs=[
                pl.BlockSpec((tn, d), lambda i: (i, 0)),        # features (bf16)
                _resident_spec((d, c_pad), single_buffer),      # s * Wn^T (bf16)
                pl.BlockSpec((tn, 1), lambda i: (i, 0)),        # s * m[target]
                pl.BlockSpec((tn, 1), lambda i: (i, 0)),        # weight[target]
                pl.BlockSpec((tn, 1), lambda i: (i, 0)),        # targets
                _resident_spec((1, c_pad), single_buffer),      # class-pad mask
            ],
            out_specs=(
                pl.BlockSpec((1, _SUBLANES, _LANES), lambda i: (i, 0, 0)),
                pl.BlockSpec((1, _SUBLANES, _LANES), lambda i: (i, 0, 0)),
            ),
            compiler_params=compiler_params,
        )

    nums, dens = _run_with_fallback(
        make_train_call, (feat, wn_t, sm, w_i, tgt, mask_row))

    # Tiny final reduce/divide in XLA so the batch grid axis stays fully
    # "parallel" across TensorCores.
    return jnp.sum(nums[:, 0, 0]) / jnp.sum(dens[:, 0, 0])


# ----------------------------------------------------------------------------
# Pure-JAX references (mirror the PyTorch forward)
# ----------------------------------------------------------------------------
def _reference_loss(features, linear, m_list, weight_list, targets, scale):
    fn = features / jnp.maximum(
        jnp.linalg.norm(features, axis=1, keepdims=True), 1e-12)
    wn = linear / jnp.maximum(
        jnp.linalg.norm(linear, axis=1, keepdims=True), 1e-12)
    logits = fn @ wn.T
    onehot = jax.nn.one_hot(targets, linear.shape[0], dtype=jnp.float32)
    batch_m = onehot @ m_list.reshape(-1, 1)
    out = jnp.where(onehot > 0, logits - batch_m, logits)
    z = scale * out
    logp = jax.nn.log_softmax(z, axis=-1)
    per = -jnp.sum(onehot * logp, axis=-1)
    wi = weight_list[targets]
    return jnp.sum(wi * per) / jnp.sum(wi)


def _reference_logits(features, linear, scale):
    fn = features / jnp.maximum(
        jnp.linalg.norm(features, axis=1, keepdims=True), 1e-12)
    wn = linear / jnp.maximum(
        jnp.linalg.norm(linear, axis=1, keepdims=True), 1e-12)
    return scale * (fn @ wn.T)


if __name__ == "__main__":
    key = jax.random.PRNGKey(0)
    N, D, C = 12, 256, 5          # batch, in_feat (small demo), num_classes
    SCALE, MAX_M = 30.0, 0.5
    TILE_N = 8                    # small tile -> multi-tile grid + ragged final
                                  # block, exercising the row-mask path

    # --- deterministic "init" (replaces the .npy load / CUDA tensors) ---
    # TODO(synk): the original module loads ./data/num_class_list.npy; replaced
    # by an in-script constant class-count list.
    num_class_list = np.array([500, 200, 100, 50, 20], dtype=np.float64)
    m_list_np = 1.0 / np.sqrt(np.sqrt(num_class_list))
    m_list_np = m_list_np * (MAX_M / np.max(m_list_np))
    beta = 0.9999
    per_cls = (1.0 - beta) / (1.0 - np.power(beta, num_class_list))
    per_cls = per_cls / np.sum(per_cls) * len(num_class_list)
    m_list = jnp.asarray(m_list_np, dtype=jnp.float32)
    weight_list = jnp.asarray(per_cls, dtype=jnp.float32)

    # xavier_uniform for linear (C, D)
    k_w, k_x, k_t = jax.random.split(key, 3)
    bound = np.sqrt(6.0 / (D + C))
    linear = jax.random.uniform(k_w, (C, D), jnp.float32, -bound, bound)

    # inputs
    features = jax.random.normal(k_x, (N, D), jnp.float32)
    targets = jax.random.randint(k_t, (N,), 0, C, jnp.int32)

    # --- training path ---
    loss = ldam_forward(features, linear, m_list, weight_list, targets,
                        scale=SCALE, training=True, tile_n=TILE_N)
    loss = jax.block_until_ready(loss)

    # --- eval path (pred_class_logits = s * cosine) ---
    logits = ldam_forward(features, linear, m_list, weight_list, targets,
                          scale=SCALE, training=False, tile_n=TILE_N)
    logits = jax.block_until_ready(logits)

    # sanity checks vs pure-f32 references; bf16 MXU operands (f32 accumulation)
    # require looser tolerances than the previous all-f32 kernel.
    ref_loss = _reference_loss(features, linear, m_list, weight_list,
                               targets, SCALE)
    ref_logits = _reference_logits(features, linear, SCALE)
    assert np.allclose(np.asarray(loss), np.asarray(ref_loss),
                       rtol=5e-2, atol=5e-2), (loss, ref_loss)
    assert logits.shape == (N, C)
    assert np.allclose(np.asarray(logits), np.asarray(ref_logits),
                       rtol=5e-2, atol=2e-1), \
        float(np.max(np.abs(np.asarray(logits) - np.asarray(ref_logits))))

    print("KERNEL_OK")
</pallas_src>

<mosaic_0001>
module attributes {stable_mosaic.version = 11 : i64} {
  func.func @_ldam_train_kernel(%arg0: i32, %arg1: memref<8x256xbf16, #tpu.memory_space<vmem>>, %arg2: memref<256x128xbf16, #tpu.memory_space<vmem>>, %arg3: memref<8x1xf32, #tpu.memory_space<vmem>>, %arg4: memref<8x1xf32, #tpu.memory_space<vmem>>, %arg5: memref<8x1xi32, #tpu.memory_space<vmem>>, %arg6: memref<1x128xf32, #tpu.memory_space<vmem>>, %arg7: memref<1x8x128xf32, #tpu.memory_space<vmem>>, %arg8: memref<1x8x128xf32, #tpu.memory_space<vmem>>) attributes {dimension_semantics = [#tpu.dimension_semantics<parallel>], iteration_bounds = array<i64: 2>, scalar_prefetch = 0 : i64, scratch_operands = 0 : i64, tpu.core_type = #tpu.core_type<tc>, window_params = [{transform_indices = @transform_0, window_bounds = array<i64: 8, 256>}, {pipeline_mode = #tpu.pipeline_mode<synchronous>, transform_indices = @transform_1, window_bounds = array<i64: 256, 128>}, {transform_indices = @transform_2, window_bounds = array<i64: 8, 1>}, {transform_indices = @transform_3, window_bounds = array<i64: 8, 1>}, {transform_indices = @transform_4, window_bounds = array<i64: 8, 1>}, {pipeline_mode = #tpu.pipeline_mode<synchronous>, transform_indices = @transform_5, window_bounds = array<i64: 1, 128>}, {transform_indices = @transform_6, window_bounds = array<i64: 1, 8, 128>}, {transform_indices = @transform_7, window_bounds = array<i64: 1, 8, 128>}]} {
    %c0 = arith.constant 0 : index
    %c0_0 = arith.constant 0 : index
    %0 = vector.load %arg1[%c0, %c0_0] : memref<8x256xbf16, #tpu.memory_space<vmem>>, vector<8x256xbf16>
    %1 = arith.extf %0 : vector<8x256xbf16> to vector<8x256xf32>
    %2 = arith.mulf %1, %1 : vector<8x256xf32>
    %cst = arith.constant dense<0.000000e+00> : vector<8xf32>
    %3 = vector.multi_reduction <add>, %2, %cst [1] : vector<8x256xf32> to vector<8xf32>
    %4 = vector.shape_cast %3 : vector<8xf32> to vector<8x1xf32>
    %cst_1 = arith.constant 1.000000e-24 : f32
    %5 = vector.broadcast %cst_1 : f32 to vector<8x1xf32>
    %6 = arith.maximumf %4, %5 : vector<8x1xf32>
    %7 = math.rsqrt %6 : vector<8x1xf32>
    %8 = vector.broadcast %7 : vector<8x1xf32> to vector<8x256xf32>
    %9 = arith.mulf %1, %8 : vector<8x256xf32>
    %10 = arith.truncf %9 : vector<8x256xf32> to vector<8x256xbf16>
    %c0_2 = arith.constant 0 : index
    %c0_3 = arith.constant 0 : index
    %11 = vector.load %arg2[%c0_2, %c0_3] : memref<256x128xbf16, #tpu.memory_space<vmem>>, vector<256x128xbf16>
    %cst_4 = arith.constant dense<0.000000e+00> : vector<8x128xf32>
    %12 = tpu.matmul %10, %11, %cst_4 {dimension_numbers = #tpu.dot_dimension_numbers<[1], [0], [0], [1], [0, 0, 1, 1], [], []>} : vector<8x256xbf16>, vector<256x128xbf16>, vector<8x128xf32> -> vector<8x128xf32>
    %13 = tpu.iota {dimensions = array<i32: 1>} : vector<8x128xi32>
    %c0_5 = arith.constant 0 : index
    %c0_6 = arith.constant 0 : index
    %14 = vector.load %arg5[%c0_5, %c0_6] : memref<8x1xi32, #tpu.memory_space<vmem>>, vector<8x1xi32>
    %15 = vector.broadcast %14 : vector<8x1xi32> to vector<8x128xi32>
    %16 = arith.cmpi eq, %13, %15 : vector<8x128xi32>
    %17 = arith.extui %16 : vector<8x128xi1> to vector<8x128xi32>
    %18 = arith.sitofp %17 : vector<8x128xi32> to vector<8x128xf32>
    %c0_7 = arith.constant 0 : index
    %c0_8 = arith.constant 0 : index
    %19 = vector.load %arg3[%c0_7, %c0_8] : memref<8x1xf32, #tpu.memory_space<vmem>>, vector<8x1xf32>
    %20 = vector.broadcast %19 : vector<8x1xf32> to vector<8x128xf32>
    %21 = arith.mulf %18, %20 : vector<8x128xf32>
    %22 = arith.subf %12, %21 : vector<8x128xf32>
    %c0_9 = arith.constant 0 : index
    %c0_10 = arith.constant 0 : index
    %23 = vector.load %arg6[%c0_9, %c0_10] : memref<1x128xf32, #tpu.memory_space<vmem>>, vector<1x128xf32>
    %24 = vector.broadcast %23 : vector<1x128xf32> to vector<8x128xf32>
    %25 = arith.addf %22, %24 : vector<8x128xf32>
    %cst_11 = arith.constant dense<0xFF800000> : vector<8xf32>
    %26 = vector.multi_reduction <maximumf>, %25, %cst_11 [1] : vector<8x128xf32> to vector<8xf32>
    %27 = vector.shape_cast %26 : vector<8xf32> to vector<8x1xf32>
    %28 = vector.broadcast %27 : vector<8x1xf32> to vector<8x128xf32>
    %29 = arith.subf %25, %28 : vector<8x128xf32>
    %30 = math.exp %29 : vector<8x128xf32>
    %cst_12 = arith.constant dense<0.000000e+00> : vector<8xf32>
    %31 = vector.multi_reduction <add>, %30, %cst_12 [1] : vector<8x128xf32> to vector<8xf32>
    %32 = vector.shape_cast %31 : vector<8xf32> to vector<8x1xf32>
    %33 = math.log %32 : vector<8x1xf32>
    %34 = arith.addf %27, %33 : vector<8x1xf32>
    %35 = arith.mulf %18, %25 : vector<8x128xf32>
    %cst_13 = arith.constant dense<0.000000e+00> : vector<8xf32>
    %36 = vector.multi_reduction <add>, %35, %cst_13 [1] : vector<8x128xf32> to vector<8xf32>
    %37 = vector.shape_cast %36 : vector<8xf32> to vector<8x1xf32>
    %38 = arith.subf %34, %37 : vector<8x1xf32>
    %c8_i32 = arith.constant 8 : i32
    %39 = arith.muli %arg0, %c8_i32 : i32
    %40 = tpu.iota {dimensions = array<i32: 0>} : vector<8x1xi32>
    %41 = vector.broadcast %39 : i32 to vector<8x1xi32>
    %42 = arith.addi %41, %40 : vector<8x1xi32>
    %c12_i32 = arith.constant 12 : i32
    %43 = vector.broadcast %c12_i32 : i32 to vector<8x1xi32>
    %44 = arith.cmpi slt, %42, %43 : vector<8x1xi32>
    %c0_14 = arith.constant 0 : index
    %c0_15 = arith.constant 0 : index
    %45 = vector.load %arg4[%c0_14, %c0_15] : memref<8x1xf32, #tpu.memory_space<vmem>>, vector<8x1xf32>
    %cst_16 = arith.constant 0.000000e+00 : f32
    %46 = vector.broadcast %cst_16 : f32 to vector<8x1xf32>
    %47 = arith.select %44, %45, %46 : vector<8x1xi1>, vector<8x1xf32>
    %cst_17 = arith.constant 0.000000e+00 : f32
    %48 = vector.broadcast %cst_17 : f32 to vector<8x1xf32>
    %49 = arith.select %44, %38, %48 : vector<8x1xi1>, vector<8x1xf32>
    %50 = arith.mulf %47, %49 : vector<8x1xf32>
    %51 = vector.shape_cast %50 : vector<8x1xf32> to vector<1x8x1xf32>
    %cst_18 = arith.constant dense<0.000000e+00> : vector<1xf32>
    %52 = vector.multi_reduction <add>, %51, %cst_18 [1, 2] : vector<1x8x1xf32> to vector<1xf32>
    %53 = vector.shape_cast %52 : vector<1xf32> to vector<1x1x1xf32>
    %54 = vector.extract %53[0, 0, 0] : f32 from vector<1x1x1xf32>
    %55 = vector.broadcast %54 : f32 to vector<1x8x128xf32>
    %c0_19 = arith.constant 0 : index
    %c0_20 = arith.constant 0 : index
    %c0_21 = arith.constant 0 : index
    %56 = vector.load %arg7[%c0_19, %c0_20, %c0_21] : memref<1x8x128xf32, #tpu.memory_space<vmem>>, vector<1x8x128xf32>
    tpu.vector_store %arg7[%c0_19, %c0_20, %c0_21], %55 {strides = array<i32>} : memref<1x8x128xf32, #tpu.memory_space<vmem>>, vector<1x8x128xf32>,
    %57 = vector.shape_cast %47 : vector<8x1xf32> to vector<1x8x1xf32>
    %cst_22 = arith.constant dense<0.000000e+00> : vector<1xf32>
    %58 = vector.multi_reduction <add>, %57, %cst_22 [1, 2] : vector<1x8x1xf32> to vector<1xf32>
    %59 = vector.shape_cast %58 : vector<1xf32> to vector<1x1x1xf32>
    %60 = vector.extract %59[0, 0, 0] : f32 from vector<1x1x1xf32>
    %61 = vector.broadcast %60 : f32 to vector<1x8x128xf32>
    %c0_23 = arith.constant 0 : index
    %c0_24 = arith.constant 0 : index
    %c0_25 = arith.constant 0 : index
    %62 = vector.load %arg8[%c0_23, %c0_24, %c0_25] : memref<1x8x128xf32, #tpu.memory_space<vmem>>, vector<1x8x128xf32>
    tpu.vector_store %arg8[%c0_23, %c0_24, %c0_25], %61 {strides = array<i32>} : memref<1x8x128xf32, #tpu.memory_space<vmem>>, vector<1x8x128xf32>,
    return
  }
  func.func @transform_0(%arg0: i32) -> (i32, i32) {
    %c0_i32 = arith.constant 0 : i32
    %c0_i32_0 = arith.constant 0 : i32
    return %arg0, %c0_i32 : i32, i32
  }
  func.func @transform_1(%arg0: i32) -> (i32, i32) {
    %c0_i32 = arith.constant 0 : i32
    %c0_i32_0 = arith.constant 0 : i32
    %c0_i32_1 = arith.constant 0 : i32
    return %c0_i32, %c0_i32_0 : i32, i32
  }
  func.func @transform_2(%arg0: i32) -> (i32, i32) {
    %c0_i32 = arith.constant 0 : i32
    %c0_i32_0 = arith.constant 0 : i32
    return %arg0, %c0_i32 : i32, i32
  }
  func.func @transform_3(%arg0: i32) -> (i32, i32) {
    %c0_i32 = arith.constant 0 : i32
    %c0_i32_0 = arith.constant 0 : i32
    return %arg0, %c0_i32 : i32, i32
  }
  func.func @transform_4(%arg0: i32) -> (i32, i32) {
    %c0_i32 = arith.constant 0 : i32
    %c0_i32_0 = arith.constant 0 : i32
    return %arg0, %c0_i32 : i32, i32
  }
  func.func @transform_5(%arg0: i32) -> (i32, i32) {
    %c0_i32 = arith.constant 0 : i32
    %c0_i32_0 = arith.constant 0 : i32
    %c0_i32_1 = arith.constant 0 : i32
    return %c0_i32, %c0_i32_0 : i32, i32
  }
  func.func @transform_6(%arg0: i32) -> (i32, i32, i32) {
    %c0_i32 = arith.constant 0 : i32
    %c0_i32_0 = arith.constant 0 : i32
    %c0_i32_1 = arith.constant 0 : i32
    return %arg0, %c0_i32, %c0_i32_0 : i32, i32, i32
  }
  func.func @transform_7(%arg0: i32) -> (i32, i32, i32) {
    %c0_i32 = arith.constant 0 : i32
    %c0_i32_0 = arith.constant 0 : i32
    %c0_i32_1 = arith.constant 0 : i32
    return %arg0, %c0_i32, %c0_i32_0 : i32, i32, i32
  }
}

module attributes {stable_mosaic.version = 11 : i64} {
  func.func @_ldam_train_kernel(%arg0: i32, %arg1: memref<8x256xbf16, #tpu.memory_space<vmem>>, %arg2: memref<256x128xbf16, #tpu.memory_space<vmem>>, %arg3: memref<8x1xf32, #tpu.memory_space<vmem>>, %arg4: memref<8x1xf32, #tpu.memory_space<vmem>>, %arg5: memref<8x1xi32, #tpu.memory_space<vmem>>, %arg6: memref<1x128xf32, #tpu.memory_space<vmem>>, %arg7: memref<1x8x128xf32, #tpu.memory_space<vmem>>, %arg8: memref<1x8x128xf32, #tpu.memory_space<vmem>>) attributes {dimension_semantics = [#tpu.dimension_semantics<parallel>], iteration_bounds = array<i64: 2>, scalar_prefetch = 0 : i64, scratch_operands = 0 : i64, tpu.core_type = #tpu.core_type<tc>, window_params = [{transform_indices = @transform_0, window_bounds = array<i64: 8, 256>}, {pipeline_mode = #tpu.pipeline_mode<synchronous>, transform_indices = @transform_1, window_bounds = array<i64: 256, 128>}, {transform_indices = @transform_2, window_bounds = array<i64: 8, 1>}, {transform_indices = @transform_3, window_bounds = array<i64: 8, 1>}, {transform_indices = @transform_4, window_bounds = array<i64: 8, 1>}, {pipeline_mode = #tpu.pipeline_mode<synchronous>, transform_indices = @transform_5, window_bounds = array<i64: 1, 128>}, {transform_indices = @transform_6, window_bounds = array<i64: 1, 8, 128>}, {transform_indices = @transform_7, window_bounds = array<i64: 1, 8, 128>}]} {
    %c0 = arith.constant 0 : index
    %c0_0 = arith.constant 0 : index
    %0 = vector.load %arg1[%c0, %c0_0] : memref<8x256xbf16, #tpu.memory_space<vmem>>, vector<8x256xbf16>
    %1 = arith.extf %0 : vector<8x256xbf16> to vector<8x256xf32>
    %2 = arith.mulf %1, %1 : vector<8x256xf32>
    %cst = arith.constant dense<0.000000e+00> : vector<8xf32>
    %3 = vector.multi_reduction <add>, %2, %cst [1] : vector<8x256xf32> to vector<8xf32>
    %4 = vector.shape_cast %3 : vector<8xf32> to vector<8x1xf32>
    %cst_1 = arith.constant 1.000000e-24 : f32
    %5 = vector.broadcast %cst_1 : f32 to vector<8x1xf32>
    %6 = arith.maximumf %4, %5 : vector<8x1xf32>
    %7 = math.rsqrt %6 : vector<8x1xf32>
    %8 = vector.broadcast %7 : vector<8x1xf32> to vector<8x256xf32>
    %9 = arith.mulf %1, %8 : vector<8x256xf32>
    %10 = arith.truncf %9 : vector<8x256xf32> to vector<8x256xbf16>
    %c0_2 = arith.constant 0 : index
    %c0_3 = arith.constant 0 : index
    %11 = vector.load %arg2[%c0_2, %c0_3] : memref<256x128xbf16, #tpu.memory_space<vmem>>, vector<256x128xbf16>
    %cst_4 = arith.constant dense<0.000000e+00> : vector<8x128xf32>
    %12 = tpu.matmul %10, %11, %cst_4 {dimension_numbers = #tpu.dot_dimension_numbers<[1], [0], [0], [1], [0, 0, 1, 1], [], []>} : vector<8x256xbf16>, vector<256x128xbf16>, vector<8x128xf32> -> vector<8x128xf32>
    %13 = tpu.iota {dimensions = array<i32: 1>} : vector<8x128xi32>
    %c0_5 = arith.constant 0 : index
    %c0_6 = arith.constant 0 : index
    %14 = vector.load %arg5[%c0_5, %c0_6] : memref<8x1xi32, #tpu.memory_space<vmem>>, vector<8x1xi32>
    %15 = vector.broadcast %14 : vector<8x1xi32> to vector<8x128xi32>
    %16 = arith.cmpi eq, %13, %15 : vector<8x128xi32>
    %17 = arith.extui %16 : vector<8x128xi1> to vector<8x128xi32>
    %18 = arith.sitofp %17 : vector<8x128xi32> to vector<8x128xf32>
    %c0_7 = arith.constant 0 : index
    %c0_8 = arith.constant 0 : index
    %19 = vector.load %arg3[%c0_7, %c0_8] : memref<8x1xf32, #tpu.memory_space<vmem>>, vector<8x1xf32>
    %20 = vector.broadcast %19 : vector<8x1xf32> to vector<8x128xf32>
    %21 = arith.mulf %18, %20 : vector<8x128xf32>
    %22 = arith.subf %12, %21 : vector<8x128xf32>
    %c0_9 = arith.constant 0 : index
    %c0_10 = arith.constant 0 : index
    %23 = vector.load %arg6[%c0_9, %c0_10] : memref<1x128xf32, #tpu.memory_space<vmem>>, vector<1x128xf32>
    %24 = vector.broadcast %23 : vector<1x128xf32> to vector<8x128xf32>
    %25 = arith.addf %22, %24 : vector<8x128xf32>
    %cst_11 = arith.constant dense<0xFF800000> : vector<8xf32>
    %26 = vector.multi_reduction <maximumf>, %25, %cst_11 [1] : vector<8x128xf32> to vector<8xf32>
    %27 = vector.shape_cast %26 : vector<8xf32> to vector<8x1xf32>
    %28 = vector.broadcast %27 : vector<8x1xf32> to vector<8x128xf32>
    %29 = arith.subf %25, %28 : vector<8x128xf32>
    %30 = math.exp %29 : vector<8x128xf32>
    %cst_12 = arith.constant dense<0.000000e+00> : vector<8xf32>
    %31 = vector.multi_reduction <add>, %30, %cst_12 [1] : vector<8x128xf32> to vector<8xf32>
    %32 = vector.shape_cast %31 : vector<8xf32> to vector<8x1xf32>
    %33 = math.log %32 : vector<8x1xf32>
    %34 = arith.addf %27, %33 : vector<8x1xf32>
    %35 = arith.mulf %18, %25 : vector<8x128xf32>
    %cst_13 = arith.constant dense<0.000000e+00> : vector<8xf32>
    %36 = vector.multi_reduction <add>, %35, %cst_13 [1] : vector<8x128xf32> to vector<8xf32>
    %37 = vector.shape_cast %36 : vector<8xf32> to vector<8x1xf32>
    %38 = arith.subf %34, %37 : vector<8x1xf32>
    %c8_i32 = arith.constant 8 : i32
    %39 = arith.muli %arg0, %c8_i32 : i32
    %40 = tpu.iota {dimensions = array<i32: 0>} : vector<8x1xi32>
    %41 = vector.broadcast %39 : i32 to vector<8x1xi32>
    %42 = arith.addi %41, %40 : vector<8x1xi32>
    %c12_i32 = arith.constant 12 : i32
    %43 = vector.broadcast %c12_i32 : i32 to vector<8x1xi32>
    %44 = arith.cmpi slt, %42, %43 : vector<8x1xi32>
    %c0_14 = arith.constant 0 : index
    %c0_15 = arith.constant 0 : index
    %45 = vector.load %arg4[%c0_14, %c0_15] : memref<8x1xf32, #tpu.memory_space<vmem>>, vector<8x1xf32>
    %cst_16 = arith.constant 0.000000e+00 : f32
    %46 = vector.broadcast %cst_16 : f32 to vector<8x1xf32>
    %47 = arith.select %44, %45, %46 : vector<8x1xi1>, vector<8x1xf32>
    %cst_17 = arith.constant 0.000000e+00 : f32
    %48 = vector.broadcast %cst_17 : f32 to vector<8x1xf32>
    %49 = arith.select %44, %38, %48 : vector<8x1xi1>, vector<8x1xf32>
    %50 = arith.mulf %47, %49 : vector<8x1xf32>
    %51 = vector.shape_cast %50 : vector<8x1xf32> to vector<1x8x1xf32>
    %cst_18 = arith.constant dense<0.000000e+00> : vector<1xf32>
    %52 = vector.multi_reduction <add>, %51, %cst_18 [1, 2] : vector<1x8x1xf32> to vector<1xf32>
    %53 = vector.shape_cast %52 : vector<1xf32> to vector<1x1x1xf32>
    %54 = vector.extract %53[0, 0, 0] : f32 from vector<1x1x1xf32>
    %55 = vector.broadcast %54 : f32 to vector<1x8x128xf32>
    %c0_19 = arith.constant 0 : index
    %c0_20 = arith.constant 0 : index
    %c0_21 = arith.constant 0 : index
    %56 = vector.load %arg7[%c0_19, %c0_20, %c0_21] : memref<1x8x128xf32, #tpu.memory_space<vmem>>, vector<1x8x128xf32>
    tpu.vector_store %arg7[%c0_19, %c0_20, %c0_21], %55 {strides = array<i32>} : memref<1x8x128xf32, #tpu.memory_space<vmem>>, vector<1x8x128xf32>,
    %57 = vector.shape_cast %47 : vector<8x1xf32> to vector<1x8x1xf32>
    %cst_22 = arith.constant dense<0.000000e+00> : vector<1xf32>
    %58 = vector.multi_reduction <add>, %57, %cst_22 [1, 2] : vector<1x8x1xf32> to vector<1xf32>
    %59 = vector.shape_cast %58 : vector<1xf32> to vector<1x1x1xf32>
    %60 = vector.extract %59[0, 0, 0] : f32 from vector<1x1x1xf32>
    %61 = vector.broadcast %60 : f32 to vector<1x8x128xf32>
    %c0_23 = arith.constant 0 : index
    %c0_24 = arith.constant 0 : index
    %c0_25 = arith.constant 0 : index
    %62 = vector.load %arg8[%c0_23, %c0_24, %c0_25] : memref<1x8x128xf32, #tpu.memory_space<vmem>>, vector<1x8x128xf32>
    tpu.vector_store %arg8[%c0_23, %c0_24, %c0_25], %61 {strides = array<i32>} : memref<1x8x128xf32, #tpu.memory_space<vmem>>, vector<1x8x128xf32>,
    return
  }
  func.func @transform_0(%arg0: i32) -> (i32, i32) {
    %c0_i32 = arith.constant 0 : i32
    %c0_i32_0 = arith.constant 0 : i32
    return %arg0, %c0_i32 : i32, i32
  }
  func.func @transform_1(%arg0: i32) -> (i32, i32) {
    %c0_i32 = arith.constant 0 : i32
    %c0_i32_0 = arith.constant 0 : i32
    %c0_i32_1 = arith.constant 0 : i32
    return %c0_i32, %c0_i32_0 : i32, i32
  }
  func.func @transform_2(%arg0: i32) -> (i32, i32) {
    %c0_i32 = arith.constant 0 : i32
    %c0_i32_0 = arith.constant 0 : i32
    return %arg0, %c0_i32 : i32, i32
  }
  func.func @transform_3(%arg0: i32) -> (i32, i32) {
    %c0_i32 = arith.constant 0 : i32
    %c0_i32_0 = arith.constant 0 : i32
    return %arg0, %c0_i32 : i32, i32
  }
  func.func @transform_4(%arg0: i32) -> (i32, i32) {
    %c0_i32 = arith.constant 0 : i32
    %c0_i32_0 = arith.constant 0 : i32
    return %arg0, %c0_i32 : i32, i32
  }
  func.func @transform_5(%arg0: i32) -> (i32, i32) {
    %c0_i32 = arith.constant 0 : i32
    %c0_i32_0 = arith.constant 0 : i32
    %c0_i32_1 = arith.constant 0 : i32
    return %c0_i32, %c0_i32_0 : i32, i32
  }
  func.func @transform_6(%arg0: i32) -> (i32, i32, i32) {
    %c0_i32 = arith.constant 0 : i32
    %c0_i32_0 = arith.constant 0 : i32
    %c0_i32_1 = arith.constant 0 : i32
    return %arg0, %c0_i32, %c0_i32_0 : i32, i32, i32
  }
  func.func @transform_7(%arg0: i32) -> (i32, i32, i32) {
    %c0_i32 = arith.constant 0 : i32
    %c0_i32_0 = arith.constant 0 : i32
    %c0_i32_1 = arith.constant 0 : i32
    return %arg0, %c0_i32, %c0_i32_0 : i32, i32, i32
  }
}

</mosaic_0001>

<bundles_post_ra>
// kernel: tpu_custom_call.1
= control target key start
LH: loop header
LB: loop body
LE: loop exit
PB: predicated region body
PF: predicated region fallthrough
CT: control target
= control target key end

     0   :  { %s1292_s0 = inlined_call_operand.vmem [shape: bf16[12,256], index: 0, kind: input, shape index: {}]   ;;  %s1293_s1 = inlined_call_operand.hbm [shape: bf16[256,128], index: 1, kind: input, shape index: {}]   ;;  %s1294_s2 = inlined_call_operand.vmem [shape: f32[12,1], index: 2, kind: input, shape index: {}]   ;;  %s1295_s3 = inlined_call_operand.vmem [shape: f32[12,1], index: 3, kind: input, shape index: {}]   ;;  %s1296_s4 = inlined_call_operand.vmem [shape: s32[12,1], index: 4, kind: input, shape index: {}]   ;;  %s1297_s5 = inlined_call_operand.vmem [shape: f32[1,128], index: 5, kind: input, shape index: {}]   ;;  %s1298_s6 = inlined_call_operand.hbm [shape: f32[2,8,128], index: 6, kind: output, shape index: {0}]   ;;  %s1299_s7 = inlined_call_operand.hbm [shape: f32[2,8,128], index: 7, kind: output, shape index: {1}]  }
   0x1   :  { %1303 = sst [smem:[#allocation11_spill]] %s1292_s0 }
   0x2   :  { %1304 = sst [smem:[#allocation12_spill]] %s1293_s1 }
   0x3   :  { %13 = vsyncpa [#allocation3], 0 }
   0x4   :  { %14 = vsyncpa [#allocation4], 0 }
   0x5   :  { %16 = vsyncpa [#allocation4 + $0x1], 0 }
   0x6   :  { %17 = vsyncpa [#allocation7], 0 }
   0x7   :  { %19 = vsyncpa [#allocation7 + $0x1], 0  ;;  %s1105_s24 = smov 0   ;;  %s1107_s25 = smov 0  }
   0x8   :  { %s1109_s26 = smov 0   ;;  %s1111_s27 = smov 0  }
   0x9 LB: > { %s1126_s28 = sadd.s32 4294967295, %s1056_s27   ;;  %s782_s29 = sadd.s32 4294967294, %s1056_s27   ;;  %s1056_s27 = sphi %s1111_s27, %s1319_s27   ;;  %s1052_s26 = sphi %s1109_s26, %s1318_s26   ;;  %s1048_s25 = sphi %s1107_s25, %s1317_s25   ;;  %s1044_s24 = sphi %s1105_s24, %s1316_s24  }
   0xa   : > { %s1130_s30 = sadd.s32 1, %s1056_s27   ;;  %s178_s8 = sadd.s32 1, %s1052_s26 }
   0xb   : > { %s175_s9 = ssub.s32 %s1056_s27, %s1130_s30  ;;  %p188_p0 = scmp.ne.s32.totalorder %s1052_s26, %s1048_s25 }
   0xc   : > { %p176_p1 = scmp.eq.s32.totalorder %s175_s9, 0  ;;  %p189_p2 = scmp.eq.s32.totalorder %s1126_s28, 1 }
   0xd   : > { %p194_p3 = scmp.ne.s32.totalorder %s1048_s25, %s1044_s24  ;;  %p195_p4 = scmp.eq.s32.totalorder %s782_s29, 1 }
   0xe   : > { %s1141_s10 = scalar_select %p176_p1, %s1052_s26, %s178_s8  }
   0xf   : > { %p1143_p5 = por %p189_p2, %p188_p0  ;;  %p1147_p6 = por %p195_p4, %p194_p3 }
  0x10   : > { %p783_p7 = scmp.ge.s32.totalorder %s1056_s27, 1  ;;  %p228_p8 = scmp.lt.s32.totalorder %s1056_s27, 3 }
  0x11   : > { %s1305_s11 = scalar_select %p1143_p5, 1, 0 }
  0x12   : > { %s1306_s12 = scalar_select %p1147_p6, 1, 0 }
  0x13   : > { %p1300_p9 = scmp.eq.s32.totalorder %s1126_s28, 0  ;;  %p1154_p10 = pnand %p783_p7, %p228_p8 }
  0x14   : > { %s1058_s14 = smov [#allocation2]   ;;  %s1309_s1 = sld [smem:[#allocation12_spill]] }
  0x15   : > { %s1307_s13 = scalar_select %p1154_p10, 1, 0 }
  0x16   : > { %s240_s15 = sshll.u32 %s1058_s14, 4  ;;  %p855_p11 = pneg %p1154_p10  ;;  %s241_s15 = int_to_ptr.vmem [resolvable:$true] %s240_s15 }
  0x18   : > { %p1162_p12 = pnand %p1300_p9, %p855_p11 }
  0x1a   : > { %s930_s19 = scalar_lea.hbm %s1309_s1, 2048  ;;  %p932_p0 = pneg %p1162_p12 }
  0x1b   : > { %p931_p13 = scmp.ne.s32.totalorder %s1309_s1, %s930_s19  ;;  %p937_p3 = scmp.lt.u32.totalorder %s930_s19, %s1309_s1 }
  0x1d   : > { %p933_p1 = pnand %p932_p0, %p931_p13 }
  0x1f   : > { %p934_p2 = pneg %p933_p1 }
  0x21   : > { %p939_p4 = pnand %p937_p3, %p934_p2 }
  0x23   : > { %942 = shalt.err (!%p939_p4)
}
  0x24   : > { %s943_s29 = scalar_lea.vmem %s241_s15, 2048  ;;  %p951_p9 = scmp.lt.s32.totalorder %s241_s15, %s241_s15 }
  0x25   : > { %p944_p7 = scmp.ne.s32.totalorder %s241_s15, %s943_s29  ;;  %p952_p6 = scmp.lt.s32.totalorder %s943_s29, %s943_s29 }
  0x27   : > { %p946_p8 = pnand %p944_p7, %p932_p0  ;;  %p953_p5 = por %p952_p6, %p951_p9 }
  0x29   : > { %p947_p11 = pneg %p946_p8 }
  0x2b   : > { %p954_p10 = pnand %p953_p5, %p947_p11 }
  0x2d   : > { %957 = shalt.err (!%p954_p10)
}
  0x2e   : > { %s1059_s8 = smov 64   ;;  %s1060_s9 = smov 4  }
  0x2f   : > { %858 = dma.hbm_to_vmem [thread:$0]  (!%p1162_p12), %s1309_s1, 2048, %s241_s15, [#allocation3], %s1059_s8, %s1059_s8, %s1060_s9  }
  0x30   : > { %p1310_p13 = scmp.ne.s32.totalorder %s1307_s13, 0 }
  0x31   : > { %p1311_p1 = scmp.eq.s32.totalorder (!%p1310_p13), %s1126_s28, 0 }
  0x32   : > { %288 = sbr.rel (%p1310_p13) target bundleno = 1014 (0x3f6), region = 44 }
  0x39   : > { %1031 = dma.done.wait (%p1311_p1), [#allocation3], 2048   ;;  %p1312_p0 = pmov %p1311_p1 }
  0x3a   : > { %p337_p5 = scmp.lt.s32.totalorder %s1126_s28, 1  ;;  %s1313_s0 = sld [smem:[#allocation11_spill]]  ;;  %v908_v3 = vld [vmem:[#allocation2 + $0x40] sm:$0xff]   ;;  %v910_v7 = vld [vmem:[#allocation2 + $0x48] sm:$0xff]   ;;  %v912_v10 = vld [vmem:[#allocation2 + $0x50] sm:$0xff]   ;;  %v1061_v22 = vmov 0   ;;  %v537_v32 = vlaneseq }
  0x3b   : > { %1033 = vsyncadd (%p1312_p0), [#allocation3], 4294965248  ;;  %v909_v4 = vld [vmem:[#allocation2] sm:$0xff]   ;;  %821 = vmatprep.subr.bf16.mxu0 %v908_v3  ;;  %v911_v8 = vld [vmem:[#allocation2 + $0x8] sm:$0xff]   ;;  %906 = vset.pattern.permute.xlu0 %v1061_v22  ;;  %v1062_v36 = vmov 0.0   ;;  %s813_s17 = sshll.u32 %s1126_s28, 3 }
  0x3c   : > { %s338_s18 = scalar_select %p337_p5, %s1126_s28, 1  ;;  %822 = vmatpush3.bf16.msra.mxu0 %v909_v4  ;;  %v913_v11 = vld [vmem:[#allocation2 + $0x10] sm:$0xff]   ;;  %v914_v12 = vld [vmem:[#allocation2 + $0x58] sm:$0xff]   ;;  %v916_v14 = vld [vmem:[#allocation2 + $0x60] sm:$0xff]   ;;  %907 = vset.pattern.permute.xlu1 %v1061_v22  ;;  %v538_v33 = vand.u32 127, %v537_v32  ;;  %v578_v52 = vshrl.u32 %v537_v32, 7  ;;  %v579_v53 = vstv %s813_s17 }
  0x3d   : > { %823 = vmatprep.subr.bf16.mxu0 %v910_v7  ;;  %v915_v13 = vld [vmem:[#allocation2 + $0x18] sm:$0xff]   ;;  %v917_v15 = vld [vmem:[#allocation2 + $0x20] sm:$0xff]   ;;  %v918_v16 = vld [vmem:[#allocation2 + $0x68] sm:$0xff]   ;;  %vm586_vm2 = vcmask 7168   ;;  %p1314_p9 = scmp.ne.s32.totalorder %s1305_s11, 0  ;;  %s1063_s9 = smov [#allocation5]  }
  0x3e   : > { %s1190_s19 = sshll.u32 %s338_s18, 3  ;;  %v919_v17 = vld [vmem:[#allocation2 + $0x28] sm:$0xff]   ;;  %v920_v18 = vld [vmem:[#allocation2 + $0x70] sm:$0xff]   ;;  %v922_v20 = vld [vmem:[#allocation2 + $0x78] sm:$0xff]   ;;  %v580_v54 = vadd.s32 %v579_v53, %v578_v52 }
  0x3f   : > { %v921_v19 = vld [vmem:[#allocation2 + $0x30] sm:$0xff]   ;;  %v923_v21 = vld [vmem:[#allocation2 + $0x38] sm:$0xff]   ;;  %s353_s22 = scalar_lea.vmem %s1296_s4, %s1190_s19  ;;  %s345_s8 = scalar_lea.vmem %s1294_s2, %s1190_s19  ;;  %v812_v44 = vld [vmem:[%s1297_s5] ss:$0 sm:$0xff] }
  0x40   : > { %s341_s15 = scalar_lea.vmem %s1313_s0, %s1190_s19  ;;  %824 = vmatpush3.bf16.msra.mxu0 %v911_v8  ;;  %v539_v23 = vld [vmem:[%s353_s22] sm:$0xff]  ;;  %s349_s20 = scalar_lea.vmem %s1295_s3, %s1190_s19  ;;  %vm581_vm1 = vcmp.lt.s32.totalorder %v580_v54, 12 }
  0x41   : > { %v355_v0 = vld [vmem:[%s341_s15] sm:$0xff]  ;;  %825 = vmatprep.subr.bf16.mxu0 %v912_v10  ;;  %s1213_s19 = sand.u32 1, %s1048_s25   ;;  %s816_s22 = sshll.u32 %s1126_s28, 7 }
  0x42   : > { %v356_v1 = vunpack.c.l.bf16 %v355_v0  ;;  %v357_v2 = vunpack.c.h.bf16 %v355_v0  ;;  %v546_v24 = vld [vmem:[%s345_s8] sm:$0xff]  ;;  %s788_s15 = sshll.u32 %s1213_s19, 3  ;;  %s1222_s14 = scalar_lea.hbm %s1298_s6, %s816_s22 }
  0x43   : > { %549 = vperm.xlu1 %907, %v546_v24   ;;  %v582_v55 = vld [vmem:[%s349_s20] sm:$0xff]  ;;  %s336_s13 = scalar_lea.vmem [#allocation6], %s788_s15  ;;  %s329_s23 = scalar_lea.vmem [#allocation5], %s788_s15 }
  0x44   : > { %v358_v5 = vmul.f32 %v356_v1, %v356_v1  ;;  %v359_v6 = vmul.f32 %v357_v2, %v357_v2  ;;  %826 = vmatpush3.bf16.msra.mxu0 %v913_v11  ;;  %v583_v56 = vsel %vm581_vm1, %v582_v55, 0.0  ;;  %s643_s21 = sshll.u32 %s336_s13, 4  ;;  %s630_s29 = sshll.u32 %s329_s23, 4  ;;  %s1217_s21 = int_to_ptr.vmem [resolvable:$true] %s643_s21  ;;  %s1224_s29 = int_to_ptr.vmem [resolvable:$true] %s630_s29 }
  0x45   : > { %827 = vmatprep.subr.bf16.mxu0 %v914_v12  ;;  %v599_v57 = vsel %vm586_vm2, %v583_v56, 0.0  ;;  %s1229_s20 = scalar_lea.hbm %s1299_s7, %s816_s22  ;;  %s612_s15 = scalar_lea.sflag [#allocation4], %s1213_s19 }
  0x46   : > { %v360_v9 = vadd.f32 %v359_v6, %v358_v5  ;;  %s958_s8 = scalar_lea.vmem %s1224_s29, 128  ;;  %s962_s0 = sshll.u32 %s1063_s9, 4  ;;  %s963_s0 = int_to_ptr.vmem [resolvable:$false] %s962_s0 }
  0x47   : > { %p959_p6 = scmp.ne.s32.totalorder %s1224_s29, %s958_s8  ;;  %s964_s1 = scalar_lea.vmem %s963_s0, 256 }
  0x48   : > { %361 = vadd.xlane.f32.xlu0 %v360_v9  ;;  %828 = vmatpush3.bf16.msra.mxu0 %v915_v13  ;;  %p965_p2 = scmp.lt.s32.totalorder %s1224_s29, %s963_s0  ;;  %p966_p3 = scmp.lt.s32.totalorder %s964_s1, %s958_s8 }
  0x49   : > { %829 = vmatprep.subr.bf16.mxu0 %v916_v14  ;;  %p960_p10 = pnand %p959_p6, %p1314_p9 }
  0x4a   : > { %p967_p4 = por %p966_p3, %p965_p2 }
  0x4b   : > { %p961_p12 = pneg %p960_p10 }
  0x4c   : > { %830 = vmatpush3.bf16.msra.mxu0 %v917_v15 }
  0x4d   : > { %831 = vmatprep.subr.bf16.mxu0 %v918_v16  ;;  %p968_p7 = pnand %p967_p4, %p961_p12 }
  0x50   : > { %832 = vmatpush3.bf16.msra.mxu0 %v919_v17 }
  0x51   : > { %833 = vmatprep.subr.bf16.mxu0 %v920_v18 }
  0x54   : > { %834 = vmatpush3.bf16.msra.mxu0 %v921_v19 }
  0x55   : > { %835 = vmatprep.subr.bf16.mxu0 %v922_v20 }
  0x58   : > { %836 = vmatpush3.bf16.msra.mxu0 %v923_v21 }
  0x5e   : > { %541 = vperm.xlu0 %906, %v539_v23  }
  0xc2   : > { %v550_v35 = vpop.permute.xlu1 %549 }
  0xd5   : > { %v362_v25 = vpop.xlane.xlu0 %361 }
  0xd6   : > { %v363_v26 = vmax.f32 %v362_v25, 1e-24 }
  0xd8   : > { %924 = vrsqrt.f32 %v363_v26 }
  0xdd   : > { %v542_v34 = vpop.permute.xlu0 %541 }
  0xde   : > { %vm543_vm0 = vcmp.eq.s32.totalorder %v538_v33, %v542_v34 }
  0xdf   : > { %v811_v37 = vsel %vm543_vm0, 1.0, %v1062_v36 }
  0xe0   : > { %v552_v39 = vmul.f32 %v811_v37, %v550_v35 }
  0xe2   : > { %v925_v27 = vpop.eup %924 }
  0xe3   : > { %v366_v28 = vmul.f32 %v925_v27, %v357_v2  ;;  %v365_v29 = vmul.f32 %v925_v27, %v356_v1 }
  0xe5   : > { %v368_v30 = vpack.c.bf16 %v366_v28, %v366_v28  ;;  %v367_v31 = vpack.c.bf16 %v365_v29, %v365_v29 }
  0xe7   : > { %529 = vmatprep.mubr.bf16.mxu0 %v368_v30 }
  0xe8   : > { %530 = vmatmul.mubr.bf16.vlgmr.msra.gmra.mrb[0].mxu0 %v367_v31 }
 0x1bb   : > { %v837_v38 = vpop.f32.mrb[0].mxu0 }
 0x1bc   : > { %v838_v40 = vpop.f32.mrb[1].mxu0 }
 0x1bd   : > { %v839_v41 = vadd.f32 %v838_v40, %v837_v38  ;;  %v840_v42 = vpop.f32.mrb[2].mxu0 }
 0x1be   : > { %v841_v43 = vpop.f32.mrb[3].mxu0 }
 0x1bf   : > { %v553_v45 = vsub.f32 %v839_v41, %v552_v39 }
 0x1c1   : > { %v561_v46 = vadd.f32 %v812_v44, %v553_v45 }
 0x1c3   : > { %562 = vmax.xlane.f32.xlu1 %v561_v46  ;;  %v572_v51 = vmul.f32 %v811_v37, %v561_v46 }
 0x250   : > { %v563_v47 = vpop.xlane.xlu1 %562 }
 0x251   : > { %v564_v48 = vsub.f32 %v561_v46, %v563_v47 }
 0x253   : > { %v565_v49 = vmul.f32 1.442695, %v564_v48 }
 0x255   : > { %926 = vpow2.f32 %v565_v49 }
 0x25f   : > { %v927_v50 = vpop.eup %926 }
 0x260   : > { %567 = vadd.xlane.f32.xlu1 %v927_v50 }
 0x264   : > { %573 = vadd.xlane.f32.xlu1 %v572_v51 }
 0x268   : > { %600 = vadd.xlane.f32.xlu1 %v599_v57 }
 0x2ed   : > { %v568_v58 = vpop.xlane.xlu1 %567 }
 0x2ee   : > { %928 = vlog2.f32 %v568_v58 }
 0x2f1   : > { %v574_v62 = vpop.xlane.xlu1 %573 }
 0x2f5   : > { %v601_v3 = vpop.xlane.xlu1 %600 }
 0x2f6   : > { %v602_v4 = vrot.slane %v601_v3, 4 }
 0x2f8   : > { %v929_v59 = vpop.eup %928  ;;  %v603_v5 = vadd.f32 %v602_v4, %v601_v3 }
 0x2f9   : > { %v570_v60 = vmul.f32 0.6931472, %v929_v59 }
 0x2fa   : > { %v604_v6 = vrot.slane %v603_v5, 2 }
 0x2fb   : > { %v571_v61 = vadd.f32 %v570_v60, %v563_v47 }
 0x2fc   : > { %v605_v10 = vadd.f32 %v604_v6, %v603_v5 }
 0x2fd   : > { %v575_v63 = vsub.f32 %v571_v61, %v574_v62 }
 0x2fe   : > { %v606_v13 = vrot.slane %v605_v10, 1 }
 0x2ff   : > { %v584_v0 = vsel %vm581_vm1, %v575_v63, 0.0 }
 0x300   : > { %v585_v1 = vmul.f32 %v584_v0, %v583_v56  ;;  %v607_v16 = vadd.f32 %v606_v13, %v605_v10 }
 0x302   : > { %v587_v2 = vsel %vm586_vm2, %v585_v1, 0.0 }
 0x303   : > { %588 = vadd.xlane.f32.xlu0 %v587_v2 }
 0x390   : > { %v589_v7 = vpop.xlane.xlu0 %588 }
 0x391   : > { %v590_v8 = vrot.slane %v589_v7, 4 }
 0x393   : > { %v591_v9 = vadd.f32 %v590_v8, %v589_v7 }
 0x395   : > { %v592_v11 = vrot.slane %v591_v9, 2 }
 0x397   : > { %v593_v12 = vadd.f32 %v592_v11, %v591_v9 }
 0x399   : > { %v594_v14 = vrot.slane %v593_v12, 1 }
 0x39b   : > { %v595_v15 = vadd.f32 %v594_v14, %v593_v12 }
 0x39d   : > { %843 = vpush %v595_v15 }
 0x39e   : > { %845 = vpush %v607_v16 }
 0x3ce   : > { %s844_s17 = spop %843 }
 0x3cf   : > { %v597_v17 = vstv %s844_s17  ;;  %s846_s18 = spop %845 }
 0x3d0   : > { %598 = vst [vmem:[%s329_s23] sm:$0xff] %v597_v17  ;;  %v609_v18 = vstv %s846_s18 }
 0x3d1   : > { %610 = vst [vmem:[%s336_s13] sm:$0xff] %v609_v18 }
 0x3d2   : > { %971 = shalt.err (!%p968_p7)
}
 0x3d3   : > { %s972_s13 = scalar_lea.hbm %s1222_s14, 128  ;;  %s976_s17 = scalar_lea.hbm %s1298_s6, 256 }
 0x3d4   : > { %p973_p8 = scmp.ne.s32.totalorder %s1222_s14, %s972_s13  ;;  %p977_p1 = scmp.lt.u32.totalorder %s1222_s14, %s1298_s6 }
 0x3d5   : > { %p978_p0 = scmp.lt.u32.totalorder %s976_s17, %s972_s13  ;;  %p980_p6 = scmp.lt.u32.totalorder %s972_s13, %s1222_s14 }
 0x3d6   : > { %p974_p11 = pnand %p973_p8, %p1314_p9 }
 0x3d7   : > { %p979_p5 = por %p978_p0, %p977_p1 }
 0x3d8   : > { %p975_p13 = pneg %p974_p11 }
 0x3d9   : > { %p981_p10 = por %p980_p6, %p979_p5 }
 0x3db   : > { %p982_p12 = pnand %p981_p10, %p975_p13 }
 0x3dd   : > { %985 = shalt.err (!%p982_p12)
}
 0x3de   : > { %851 = dma.vmem_to_hbm [thread:$0]  (%p1314_p9), %s1224_s29, 128, %s1222_s14, %s612_s15  }
 0x3df   : > { %s617_s1 = scalar_lea.sflag [#allocation7], %s1213_s19  ;;  %s986_s16 = scalar_lea.vmem %s1217_s21, 128 }
 0x3e0   : > { %p987_p2 = scmp.ne.s32.totalorder %s1217_s21, %s986_s16  ;;  %s1064_s28 = smov [#allocation6]  }
 0x3e1   : > { %s990_s8 = sshll.u32 %s1064_s28, 4  ;;  %s991_s8 = int_to_ptr.vmem [resolvable:$false] %s990_s8 }
 0x3e2   : > { %p988_p3 = pnand %p987_p2, %p1314_p9  ;;  %s992_s9 = scalar_lea.vmem %s991_s8, 256 }
 0x3e3   : > { %p993_p7 = scmp.lt.s32.totalorder %s1217_s21, %s991_s8  ;;  %p994_p8 = scmp.lt.s32.totalorder %s992_s9, %s986_s16 }
 0x3e4   : > { %p989_p4 = pneg %p988_p3 }
 0x3e5   : > { %p995_p11 = por %p994_p8, %p993_p7 }
 0x3e7   : > { %p996_p13 = pnand %p995_p11, %p989_p4 }
 0x3e9   : > { %999 = shalt.err (!%p996_p13)
}
 0x3ea   : > { %s1000_s19 = scalar_lea.hbm %s1229_s20, 128  ;;  %s1004_s15 = scalar_lea.hbm %s1299_s7, 256 }
 0x3eb   : > { %p1001_p1 = scmp.ne.s32.totalorder %s1229_s20, %s1000_s19  ;;  %p1005_p6 = scmp.lt.u32.totalorder %s1229_s20, %s1299_s7 }
 0x3ec   : > { %p1006_p10 = scmp.lt.u32.totalorder %s1004_s15, %s1000_s19  ;;  %p1008_p2 = scmp.lt.u32.totalorder %s1000_s19, %s1229_s20 }
 0x3ed   : > { %p1002_p0 = pnand %p1001_p1, %p1314_p9 }
 0x3ee   : > { %p1007_p12 = por %p1006_p10, %p1005_p6 }
 0x3ef   : > { %p1003_p5 = pneg %p1002_p0 }
 0x3f0   : > { %p1009_p3 = por %p1008_p2, %p1007_p12 }
 0x3f2   : > { %p1010_p4 = pnand %p1009_p3, %p1003_p5 }
 0x3f4   : > { %1013 = shalt.err (!%p1010_p4)
}
 0x3f5   : > { %852 = dma.vmem_to_hbm [thread:$0]  (%p1314_p9), %s1217_s21, 128, %s1229_s20, %s617_s1  }
 0x3f6 PF: > { %p868_p7 = scmp.ge.s32.totalorder %s1056_s27, 2  ;;  %s655_s23 = sand.u32 1, %s1044_s24  }
 0x3f7   : > { %p1315_p8 = scmp.ne.s32.totalorder %s1306_s12, 0  ;;  %s656_s17 = scalar_lea.sflag [#allocation4], %s655_s23 }
 0x3f9   : > { %p860_p11 = pnand %p868_p7, %p1315_p8 }
 0x3fb   : > { %1035 = dma.done.wait (!%p860_p11), %s656_s17, 128  }
 0x3fc   : > { %1037 = vsyncadd (!%p860_p11), %s656_s17, 4294967168  ;;  %s665_s18 = scalar_lea.sflag [#allocation7], %s655_s23 }
 0x3fd   : > { %1039 = dma.done.wait (!%p860_p11), %s665_s18, 128  }
 0x3fe   : > { %1041 = vsyncadd (!%p860_p11), %s665_s18, 4294967168  ;;  %p22_p9 = scmp.ge.s32.totalorder %s1130_s30, 4   ;;  %s1316_s24 = smov %s1048_s25 }
 0x3ff   : > { %s1317_s25 = smov %s1052_s26  ;;  %s1318_s26 = smov %s1141_s10 }
 0x400   : > { %s1319_s27 = smov %s1130_s30  ;;  %24 = sbr.rel (!%p22_p9) target bundleno = 9 (0x9), region = 110 }
 0x407   :  { %670 = vsyncpa [#allocation3], 1 }
 0x408   :  { %672 = vsyncpa [#allocation3 + $0x1], 1 }
 0x409   :  { %673 = vsyncpa [#allocation4], 1 }
 0x40a   :  { %675 = vsyncpa [#allocation4 + $0x1], 1 }
 0x40b   :  { %676 = vsyncpa [#allocation7], 1 }
 0x40c   :  { %678 = vsyncpa [#allocation7 + $0x1], 1 }

// kernel: tpu_custom_call.1
= control target key start
LH: loop header
LB: loop body
LE: loop exit
PB: predicated region body
PF: predicated region fallthrough
CT: control target
= control target key end

     0   :  { %s1292_s0 = inlined_call_operand.vmem [shape: bf16[12,256], index: 0, kind: input, shape index: {}]   ;;  %s1293_s1 = inlined_call_operand.hbm [shape: bf16[256,128], index: 1, kind: input, shape index: {}]   ;;  %s1294_s2 = inlined_call_operand.vmem [shape: f32[12,1], index: 2, kind: input, shape index: {}]   ;;  %s1295_s3 = inlined_call_operand.vmem [shape: f32[12,1], index: 3, kind: input, shape index: {}]   ;;  %s1296_s4 = inlined_call_operand.vmem [shape: s32[12,1], index: 4, kind: input, shape index: {}]   ;;  %s1297_s5 = inlined_call_operand.vmem [shape: f32[1,128], index: 5, kind: input, shape index: {}]   ;;  %s1298_s6 = inlined_call_operand.hbm [shape: f32[2,8,128], index: 6, kind: output, shape index: {0}]   ;;  %s1299_s7 = inlined_call_operand.hbm [shape: f32[2,8,128], index: 7, kind: output, shape index: {1}]  }
   0x1   :  { %1303 = sst [smem:[#allocation11_spill]] %s1292_s0 }
   0x2   :  { %1304 = sst [smem:[#allocation12_spill]] %s1293_s1 }
   0x3   :  { %13 = vsyncpa [#allocation3], 0 }
   0x4   :  { %14 = vsyncpa [#allocation4], 0 }
   0x5   :  { %16 = vsyncpa [#allocation4 + $0x1], 0 }
   0x6   :  { %17 = vsyncpa [#allocation7], 0 }
   0x7   :  { %19 = vsyncpa [#allocation7 + $0x1], 0  ;;  %s1105_s24 = smov 0   ;;  %s1107_s25 = smov 0  }
   0x8   :  { %s1109_s26 = smov 0   ;;  %s1111_s27 = smov 0  }
   0x9 LB: > { %s1126_s28 = sadd.s32 4294967295, %s1056_s27   ;;  %s782_s29 = sadd.s32 4294967294, %s1056_s27   ;;  %s1056_s27 = sphi %s1111_s27, %s1319_s27   ;;  %s1052_s26 = sphi %s1109_s26, %s1318_s26   ;;  %s1048_s25 = sphi %s1107_s25, %s1317_s25   ;;  %s1044_s24 = sphi %s1105_s24, %s1316_s24  }
   0xa   : > { %s1130_s30 = sadd.s32 1, %s1056_s27   ;;  %s178_s8 = sadd.s32 1, %s1052_s26 }
   0xb   : > { %s175_s9 = ssub.s32 %s1056_s27, %s1130_s30  ;;  %p188_p0 = scmp.ne.s32.totalorder %s1052_s26, %s1048_s25 }
   0xc   : > { %p176_p1 = scmp.eq.s32.totalorder %s175_s9, 0  ;;  %p189_p2 = scmp.eq.s32.totalorder %s1126_s28, 1 }
   0xd   : > { %p194_p3 = scmp.ne.s32.totalorder %s1048_s25, %s1044_s24  ;;  %p195_p4 = scmp.eq.s32.totalorder %s782_s29, 1 }
   0xe   : > { %s1141_s10 = scalar_select %p176_p1, %s1052_s26, %s178_s8  }
   0xf   : > { %p1143_p5 = por %p189_p2, %p188_p0  ;;  %p1147_p6 = por %p195_p4, %p194_p3 }
  0x10   : > { %p783_p7 = scmp.ge.s32.totalorder %s1056_s27, 1  ;;  %p228_p8 = scmp.lt.s32.totalorder %s1056_s27, 3 }
  0x11   : > { %s1305_s11 = scalar_select %p1143_p5, 1, 0 }
  0x12   : > { %s1306_s12 = scalar_select %p1147_p6, 1, 0 }
  0x13   : > { %p1300_p9 = scmp.eq.s32.totalorder %s1126_s28, 0  ;;  %p1154_p10 = pnand %p783_p7, %p228_p8 }
  0x14   : > { %s1058_s14 = smov [#allocation2]   ;;  %s1309_s1 = sld [smem:[#allocation12_spill]] }
  0x15   : > { %s1307_s13 = scalar_select %p1154_p10, 1, 0 }
  0x16   : > { %s240_s15 = sshll.u32 %s1058_s14, 4  ;;  %p855_p11 = pneg %p1154_p10  ;;  %s241_s15 = int_to_ptr.vmem [resolvable:$true] %s240_s15 }
  0x18   : > { %p1162_p12 = pnand %p1300_p9, %p855_p11 }
  0x1a   : > { %s930_s19 = scalar_lea.hbm %s1309_s1, 2048  ;;  %p932_p0 = pneg %p1162_p12 }
  0x1b   : > { %p931_p13 = scmp.ne.s32.totalorder %s1309_s1, %s930_s19  ;;  %p937_p3 = scmp.lt.u32.totalorder %s930_s19, %s1309_s1 }
  0x1d   : > { %p933_p1 = pnand %p932_p0, %p931_p13 }
  0x1f   : > { %p934_p2 = pneg %p933_p1 }
  0x21   : > { %p939_p4 = pnand %p937_p3, %p934_p2 }
  0x23   : > { %942 = shalt.err (!%p939_p4)
}
  0x24   : > { %s943_s29 = scalar_lea.vmem %s241_s15, 2048  ;;  %p951_p9 = scmp.lt.s32.totalorder %s241_s15, %s241_s15 }
  0x25   : > { %p944_p7 = scmp.ne.s32.totalorder %s241_s15, %s943_s29  ;;  %p952_p6 = scmp.lt.s32.totalorder %s943_s29, %s943_s29 }
  0x27   : > { %p946_p8 = pnand %p944_p7, %p932_p0  ;;  %p953_p5 = por %p952_p6, %p951_p9 }
  0x29   : > { %p947_p11 = pneg %p946_p8 }
  0x2b   : > { %p954_p10 = pnand %p953_p5, %p947_p11 }
  0x2d   : > { %957 = shalt.err (!%p954_p10)
}
  0x2e   : > { %s1059_s8 = smov 64   ;;  %s1060_s9 = smov 4  }
  0x2f   : > { %858 = dma.hbm_to_vmem [thread:$0]  (!%p1162_p12), %s1309_s1, 2048, %s241_s15, [#allocation3], %s1059_s8, %s1059_s8, %s1060_s9  }
  0x30   : > { %p1310_p13 = scmp.ne.s32.totalorder %s1307_s13, 0 }
  0x31   : > { %p1311_p1 = scmp.eq.s32.totalorder (!%p1310_p13), %s1126_s28, 0 }
  0x32   : > { %288 = sbr.rel (%p1310_p13) target bundleno = 1014 (0x3f6), region = 44 }
  0x39   : > { %1031 = dma.done.wait (%p1311_p1), [#allocation3], 2048   ;;  %p1312_p0 = pmov %p1311_p1 }
  0x3a   : > { %p337_p5 = scmp.lt.s32.totalorder %s1126_s28, 1  ;;  %s1313_s0 = sld [smem:[#allocation11_spill]]  ;;  %v908_v3 = vld [vmem:[#allocation2 + $0x40] sm:$0xff]   ;;  %v910_v7 = vld [vmem:[#allocation2 + $0x48] sm:$0xff]   ;;  %v912_v10 = vld [vmem:[#allocation2 + $0x50] sm:$0xff]   ;;  %v1061_v22 = vmov 0   ;;  %v537_v32 = vlaneseq }
  0x3b   : > { %1033 = vsyncadd (%p1312_p0), [#allocation3], 4294965248  ;;  %v909_v4 = vld [vmem:[#allocation2] sm:$0xff]   ;;  %821 = vmatprep.subr.bf16.mxu0 %v908_v3  ;;  %v911_v8 = vld [vmem:[#allocation2 + $0x8] sm:$0xff]   ;;  %906 = vset.pattern.permute.xlu0 %v1061_v22  ;;  %v1062_v36 = vmov 0.0   ;;  %s813_s17 = sshll.u32 %s1126_s28, 3 }
  0x3c   : > { %s338_s18 = scalar_select %p337_p5, %s1126_s28, 1  ;;  %822 = vmatpush3.bf16.msra.mxu0 %v909_v4  ;;  %v913_v11 = vld [vmem:[#allocation2 + $0x10] sm:$0xff]   ;;  %v914_v12 = vld [vmem:[#allocation2 + $0x58] sm:$0xff]   ;;  %v916_v14 = vld [vmem:[#allocation2 + $0x60] sm:$0xff]   ;;  %907 = vset.pattern.permute.xlu1 %v1061_v22  ;;  %v538_v33 = vand.u32 127, %v537_v32  ;;  %v578_v52 = vshrl.u32 %v537_v32, 7  ;;  %v579_v53 = vstv %s813_s17 }
  0x3d   : > { %823 = vmatprep.subr.bf16.mxu0 %v910_v7  ;;  %v915_v13 = vld [vmem:[#allocation2 + $0x18] sm:$0xff]   ;;  %v917_v15 = vld [vmem:[#allocation2 + $0x20] sm:$0xff]   ;;  %v918_v16 = vld [vmem:[#allocation2 + $0x68] sm:$0xff]   ;;  %vm586_vm2 = vcmask 7168   ;;  %p1314_p9 = scmp.ne.s32.totalorder %s1305_s11, 0  ;;  %s1063_s9 = smov [#allocation5]  }
  0x3e   : > { %s1190_s19 = sshll.u32 %s338_s18, 3  ;;  %v919_v17 = vld [vmem:[#allocation2 + $0x28] sm:$0xff]   ;;  %v920_v18 = vld [vmem:[#allocation2 + $0x70] sm:$0xff]   ;;  %v922_v20 = vld [vmem:[#allocation2 + $0x78] sm:$0xff]   ;;  %v580_v54 = vadd.s32 %v579_v53, %v578_v52 }
  0x3f   : > { %v921_v19 = vld [vmem:[#allocation2 + $0x30] sm:$0xff]   ;;  %v923_v21 = vld [vmem:[#allocation2 + $0x38] sm:$0xff]   ;;  %s353_s22 = scalar_lea.vmem %s1296_s4, %s1190_s19  ;;  %s345_s8 = scalar_lea.vmem %s1294_s2, %s1190_s19  ;;  %v812_v44 = vld [vmem:[%s1297_s5] ss:$0 sm:$0xff] }
  0x40   : > { %s341_s15 = scalar_lea.vmem %s1313_s0, %s1190_s19  ;;  %824 = vmatpush3.bf16.msra.mxu0 %v911_v8  ;;  %v539_v23 = vld [vmem:[%s353_s22] sm:$0xff]  ;;  %s349_s20 = scalar_lea.vmem %s1295_s3, %s1190_s19  ;;  %vm581_vm1 = vcmp.lt.s32.totalorder %v580_v54, 12 }
  0x41   : > { %v355_v0 = vld [vmem:[%s341_s15] sm:$0xff]  ;;  %825 = vmatprep.subr.bf16.mxu0 %v912_v10  ;;  %s1213_s19 = sand.u32 1, %s1048_s25   ;;  %s816_s22 = sshll.u32 %s1126_s28, 7 }
  0x42   : > { %v356_v1 = vunpack.c.l.bf16 %v355_v0  ;;  %v357_v2 = vunpack.c.h.bf16 %v355_v0  ;;  %v546_v24 = vld [vmem:[%s345_s8] sm:$0xff]  ;;  %s788_s15 = sshll.u32 %s1213_s19, 3  ;;  %s1222_s14 = scalar_lea.hbm %s1298_s6, %s816_s22 }
  0x43   : > { %549 = vperm.xlu1 %907, %v546_v24   ;;  %v582_v55 = vld [vmem:[%s349_s20] sm:$0xff]  ;;  %s336_s13 = scalar_lea.vmem [#allocation6], %s788_s15  ;;  %s329_s23 = scalar_lea.vmem [#allocation5], %s788_s15 }
  0x44   : > { %v358_v5 = vmul.f32 %v356_v1, %v356_v1  ;;  %v359_v6 = vmul.f32 %v357_v2, %v357_v2  ;;  %826 = vmatpush3.bf16.msra.mxu0 %v913_v11  ;;  %v583_v56 = vsel %vm581_vm1, %v582_v55, 0.0  ;;  %s643_s21 = sshll.u32 %s336_s13, 4  ;;  %s630_s29 = sshll.u32 %s329_s23, 4  ;;  %s1217_s21 = int_to_ptr.vmem [resolvable:$true] %s643_s21  ;;  %s1224_s29 = int_to_ptr.vmem [resolvable:$true] %s630_s29 }
  0x45   : > { %827 = vmatprep.subr.bf16.mxu0 %v914_v12  ;;  %v599_v57 = vsel %vm586_vm2, %v583_v56, 0.0  ;;  %s1229_s20 = scalar_lea.hbm %s1299_s7, %s816_s22  ;;  %s612_s15 = scalar_lea.sflag [#allocation4], %s1213_s19 }
  0x46   : > { %v360_v9 = vadd.f32 %v359_v6, %v358_v5  ;;  %s958_s8 = scalar_lea.vmem %s1224_s29, 128  ;;  %s962_s0 = sshll.u32 %s1063_s9, 4  ;;  %s963_s0 = int_to_ptr.vmem [resolvable:$false] %s962_s0 }
  0x47   : > { %p959_p6 = scmp.ne.s32.totalorder %s1224_s29, %s958_s8  ;;  %s964_s1 = scalar_lea.vmem %s963_s0, 256 }
  0x48   : > { %361 = vadd.xlane.f32.xlu0 %v360_v9  ;;  %828 = vmatpush3.bf16.msra.mxu0 %v915_v13  ;;  %p965_p2 = scmp.lt.s32.totalorder %s1224_s29, %s963_s0  ;;  %p966_p3 = scmp.lt.s32.totalorder %s964_s1, %s958_s8 }
  0x49   : > { %829 = vmatprep.subr.bf16.mxu0 %v916_v14  ;;  %p960_p10 = pnand %p959_p6, %p1314_p9 }
  0x4a   : > { %p967_p4 = por %p966_p3, %p965_p2 }
  0x4b   : > { %p961_p12 = pneg %p960_p10 }
  0x4c   : > { %830 = vmatpush3.bf16.msra.mxu0 %v917_v15 }
  0x4d   : > { %831 = vmatprep.subr.bf16.mxu0 %v918_v16  ;;  %p968_p7 = pnand %p967_p4, %p961_p12 }
  0x50   : > { %832 = vmatpush3.bf16.msra.mxu0 %v919_v17 }
  0x51   : > { %833 = vmatprep.subr.bf16.mxu0 %v920_v18 }
  0x54   : > { %834 = vmatpush3.bf16.msra.mxu0 %v921_v19 }
  0x55   : > { %835 = vmatprep.subr.bf16.mxu0 %v922_v20 }
  0x58   : > { %836 = vmatpush3.bf16.msra.mxu0 %v923_v21 }
  0x5e   : > { %541 = vperm.xlu0 %906, %v539_v23  }
  0xc2   : > { %v550_v35 = vpop.permute.xlu1 %549 }
  0xd5   : > { %v362_v25 = vpop.xlane.xlu0 %361 }
  0xd6   : > { %v363_v26 = vmax.f32 %v362_v25, 1e-24 }
  0xd8   : > { %924 = vrsqrt.f32 %v363_v26 }
  0xdd   : > { %v542_v34 = vpop.permute.xlu0 %541 }
  0xde   : > { %vm543_vm0 = vcmp.eq.s32.totalorder %v538_v33, %v542_v34 }
  0xdf   : > { %v811_v37 = vsel %vm543_vm0, 1.0, %v1062_v36 }
  0xe0   : > { %v552_v39 = vmul.f32 %v811_v37, %v550_v35 }
  0xe2   : > { %v925_v27 = vpop.eup %924 }
  0xe3   : > { %v366_v28 = vmul.f32 %v925_v27, %v357_v2  ;;  %v365_v29 = vmul.f32 %v925_v27, %v356_v1 }
  0xe5   : > { %v368_v30 = vpack.c.bf16 %v366_v28, %v366_v28  ;;  %v367_v31 = vpack.c.bf16 %v365_v29, %v365_v29 }
  0xe7   : > { %529 = vmatprep.mubr.bf16.mxu0 %v368_v30 }
  0xe8   : > { %530 = vmatmul.mubr.bf16.vlgmr.msra.gmra.mrb[0].mxu0 %v367_v31 }
 0x1bb   : > { %v837_v38 = vpop.f32.mrb[0].mxu0 }
 0x1bc   : > { %v838_v40 = vpop.f32.mrb[1].mxu0 }
 0x1bd   : > { %v839_v41 = vadd.f32 %v838_v40, %v837_v38  ;;  %v840_v42 = vpop.f32.mrb[2].mxu0 }
 0x1be   : > { %v841_v43 = vpop.f32.mrb[3].mxu0 }
 0x1bf   : > { %v553_v45 = vsub.f32 %v839_v41, %v552_v39 }
 0x1c1   : > { %v561_v46 = vadd.f32 %v812_v44, %v553_v45 }
 0x1c3   : > { %562 = vmax.xlane.f32.xlu1 %v561_v46  ;;  %v572_v51 = vmul.f32 %v811_v37, %v561_v46 }
 0x250   : > { %v563_v47 = vpop.xlane.xlu1 %562 }
 0x251   : > { %v564_v48 = vsub.f32 %v561_v46, %v563_v47 }
 0x253   : > { %v565_v49 = vmul.f32 1.442695, %v564_v48 }
 0x255   : > { %926 = vpow2.f32 %v565_v49 }
 0x25f   : > { %v927_v50 = vpop.eup %926 }
 0x260   : > { %567 = vadd.xlane.f32.xlu1 %v927_v50 }
 0x264   : > { %573 = vadd.xlane.f32.xlu1 %v572_v51 }
 0x268   : > { %600 = vadd.xlane.f32.xlu1 %v599_v57 }
 0x2ed   : > { %v568_v58 = vpop.xlane.xlu1 %567 }
 0x2ee   : > { %928 = vlog2.f32 %v568_v58 }
 0x2f1   : > { %v574_v62 = vpop.xlane.xlu1 %573 }
 0x2f5   : > { %v601_v3 = vpop.xlane.xlu1 %600 }
 0x2f6   : > { %v602_v4 = vrot.slane %v601_v3, 4 }
 0x2f8   : > { %v929_v59 = vpop.eup %928  ;;  %v603_v5 = vadd.f32 %v602_v4, %v601_v3 }
 0x2f9   : > { %v570_v60 = vmul.f32 0.6931472, %v929_v59 }
 0x2fa   : > { %v604_v6 = vrot.slane %v603_v5, 2 }
 0x2fb   : > { %v571_v61 = vadd.f32 %v570_v60, %v563_v47 }
 0x2fc   : > { %v605_v10 = vadd.f32 %v604_v6, %v603_v5 }
 0x2fd   : > { %v575_v63 = vsub.f32 %v571_v61, %v574_v62 }
 0x2fe   : > { %v606_v13 = vrot.slane %v605_v10, 1 }
 0x2ff   : > { %v584_v0 = vsel %vm581_vm1, %v575_v63, 0.0 }
 0x300   : > { %v585_v1 = vmul.f32 %v584_v0, %v583_v56  ;;  %v607_v16 = vadd.f32 %v606_v13, %v605_v10 }
 0x302   : > { %v587_v2 = vsel %vm586_vm2, %v585_v1, 0.0 }
 0x303   : > { %588 = vadd.xlane.f32.xlu0 %v587_v2 }
 0x390   : > { %v589_v7 = vpop.xlane.xlu0 %588 }
 0x391   : > { %v590_v8 = vrot.slane %v589_v7, 4 }
 0x393   : > { %v591_v9 = vadd.f32 %v590_v8, %v589_v7 }
 0x395   : > { %v592_v11 = vrot.slane %v591_v9, 2 }
 0x397   : > { %v593_v12 = vadd.f32 %v592_v11, %v591_v9 }
 0x399   : > { %v594_v14 = vrot.slane %v593_v12, 1 }
 0x39b   : > { %v595_v15 = vadd.f32 %v594_v14, %v593_v12 }
 0x39d   : > { %843 = vpush %v595_v15 }
 0x39e   : > { %845 = vpush %v607_v16 }
 0x3ce   : > { %s844_s17 = spop %843 }
 0x3cf   : > { %v597_v17 = vstv %s844_s17  ;;  %s846_s18 = spop %845 }
 0x3d0   : > { %598 = vst [vmem:[%s329_s23] sm:$0xff] %v597_v17  ;;  %v609_v18 = vstv %s846_s18 }
 0x3d1   : > { %610 = vst [vmem:[%s336_s13] sm:$0xff] %v609_v18 }
 0x3d2   : > { %971 = shalt.err (!%p968_p7)
}
 0x3d3   : > { %s972_s13 = scalar_lea.hbm %s1222_s14, 128  ;;  %s976_s17 = scalar_lea.hbm %s1298_s6, 256 }
 0x3d4   : > { %p973_p8 = scmp.ne.s32.totalorder %s1222_s14, %s972_s13  ;;  %p977_p1 = scmp.lt.u32.totalorder %s1222_s14, %s1298_s6 }
 0x3d5   : > { %p978_p0 = scmp.lt.u32.totalorder %s976_s17, %s972_s13  ;;  %p980_p6 = scmp.lt.u32.totalorder %s972_s13, %s1222_s14 }
 0x3d6   : > { %p974_p11 = pnand %p973_p8, %p1314_p9 }
 0x3d7   : > { %p979_p5 = por %p978_p0, %p977_p1 }
 0x3d8   : > { %p975_p13 = pneg %p974_p11 }
 0x3d9   : > { %p981_p10 = por %p980_p6, %p979_p5 }
 0x3db   : > { %p982_p12 = pnand %p981_p10, %p975_p13 }
 0x3dd   : > { %985 = shalt.err (!%p982_p12)
}
 0x3de   : > { %851 = dma.vmem_to_hbm [thread:$0]  (%p1314_p9), %s1224_s29, 128, %s1222_s14, %s612_s15  }
 0x3df   : > { %s617_s1 = scalar_lea.sflag [#allocation7], %s1213_s19  ;;  %s986_s16 = scalar_lea.vmem %s1217_s21, 128 }
 0x3e0   : > { %p987_p2 = scmp.ne.s32.totalorder %s1217_s21, %s986_s16  ;;  %s1064_s28 = smov [#allocation6]  }
 0x3e1   : > { %s990_s8 = sshll.u32 %s1064_s28, 4  ;;  %s991_s8 = int_to_ptr.vmem [resolvable:$false] %s990_s8 }
 0x3e2   : > { %p988_p3 = pnand %p987_p2, %p1314_p9  ;;  %s992_s9 = scalar_lea.vmem %s991_s8, 256 }
 0x3e3   : > { %p993_p7 = scmp.lt.s32.totalorder %s1217_s21, %s991_s8  ;;  %p994_p8 = scmp.lt.s32.totalorder %s992_s9, %s986_s16 }
 0x3e4   : > { %p989_p4 = pneg %p988_p3 }
 0x3e5   : > { %p995_p11 = por %p994_p8, %p993_p7 }
 0x3e7   : > { %p996_p13 = pnand %p995_p11, %p989_p4 }
 0x3e9   : > { %999 = shalt.err (!%p996_p13)
}
 0x3ea   : > { %s1000_s19 = scalar_lea.hbm %s1229_s20, 128  ;;  %s1004_s15 = scalar_lea.hbm %s1299_s7, 256 }
 0x3eb   : > { %p1001_p1 = scmp.ne.s32.totalorder %s1229_s20, %s1000_s19  ;;  %p1005_p6 = scmp.lt.u32.totalorder %s1229_s20, %s1299_s7 }
 0x3ec   : > { %p1006_p10 = scmp.lt.u32.totalorder %s1004_s15, %s1000_s19  ;;  %p1008_p2 = scmp.lt.u32.totalorder %s1000_s19, %s1229_s20 }
 0x3ed   : > { %p1002_p0 = pnand %p1001_p1, %p1314_p9 }
 0x3ee   : > { %p1007_p12 = por %p1006_p10, %p1005_p6 }
 0x3ef   : > { %p1003_p5 = pneg %p1002_p0 }
 0x3f0   : > { %p1009_p3 = por %p1008_p2, %p1007_p12 }
 0x3f2   : > { %p1010_p4 = pnand %p1009_p3, %p1003_p5 }
 0x3f4   : > { %1013 = shalt.err (!%p1010_p4)
}
 0x3f5   : > { %852 = dma.vmem_to_hbm [thread:$0]  (%p1314_p9), %s1217_s21, 128, %s1229_s20, %s617_s1  }
 0x3f6 PF: > { %p868_p7 = scmp.ge.s32.totalorder %s1056_s27, 2  ;;  %s655_s23 = sand.u32 1, %s1044_s24  }
 0x3f7   : > { %p1315_p8 = scmp.ne.s32.totalorder %s1306_s12, 0  ;;  %s656_s17 = scalar_lea.sflag [#allocation4], %s655_s23 }
 0x3f9   : > { %p860_p11 = pnand %p868_p7, %p1315_p8 }
 0x3fb   : > { %1035 = dma.done.wait (!%p860_p11), %s656_s17, 128  }
 0x3fc   : > { %1037 = vsyncadd (!%p860_p11), %s656_s17, 4294967168  ;;  %s665_s18 = scalar_lea.sflag [#allocation7], %s655_s23 }
 0x3fd   : > { %1039 = dma.done.wait (!%p860_p11), %s665_s18, 128  }
 0x3fe   : > { %1041 = vsyncadd (!%p860_p11), %s665_s18, 4294967168  ;;  %p22_p9 = scmp.ge.s32.totalorder %s1130_s30, 4   ;;  %s1316_s24 = smov %s1048_s25 }
 0x3ff   : > { %s1317_s25 = smov %s1052_s26  ;;  %s1318_s26 = smov %s1141_s10 }
 0x400   : > { %s1319_s27 = smov %s1130_s30  ;;  %24 = sbr.rel (!%p22_p9) target bundleno = 9 (0x9), region = 110 }
 0x407   :  { %670 = vsyncpa [#allocation3], 1 }
 0x408   :  { %672 = vsyncpa [#allocation3 + $0x1], 1 }
 0x409   :  { %673 = vsyncpa [#allocation4], 1 }
 0x40a   :  { %675 = vsyncpa [#allocation4 + $0x1], 1 }
 0x40b   :  { %676 = vsyncpa [#allocation7], 1 }
 0x40c   :  { %678 = vsyncpa [#allocation7 + $0x1], 1 }

</bundles_post_ra>
